<compile_context>
chip_gen: v5e
topology: v5e:2x2
jax: 0.10.0
libtpu: 0.0.40
codegen_flags: <defaults>
</compile_context>

<pallas_src>
import jax
import jax.numpy as jnp
from jax.experimental import pallas as pl
from jax.experimental.pallas import tpu as pltpu


LANE = 128        # TPU lane width; feature dims padded to multiples of this.
SUBLANE = 8       # f32 sublane granularity.
BATCH_TILE = 128  # fixed batch tile -> same kernel config for every batch size.


def _round_up(x, m):
    return ((x + m - 1) // m) * m


def qnetwork_kernel(x_ref, w1_ref, b1_ref, w2_ref, b2_ref, w3_ref, b3_ref, o_ref):
    # One batch tile of the fused 3-layer MLP.
    #  - matmuls: bf16 operands, f32 accumulation on the MXU
    #  - bias add / ReLU: f32 on the VPU (v5e-safe)
    #  - store: transpose (TB, 128) -> (128, TB) on the XLU, keep only the 8
    #    padded action rows -> lane-dense (8, TB) store, ~16x less writeback.
    x = x_ref[...].astype(jnp.bfloat16)                               # (TB, S)

    h1 = jnp.dot(x, w1_ref[...], preferred_element_type=jnp.float32)
    h1 = jnp.maximum(h1 + b1_ref[...], 0.0).astype(jnp.bfloat16)      # (TB, F1p)

    h2 = jnp.dot(h1, w2_ref[...], preferred_element_type=jnp.float32)
    h2 = jnp.maximum(h2 + b2_ref[...], 0.0).astype(jnp.bfloat16)      # (TB, F2p)

    q = jnp.dot(h2, w3_ref[...], preferred_element_type=jnp.float32)
    q = q + b3_ref[...]                                               # (TB, Ap) f32

    o_ref[...] = q.T[: o_ref.shape[0], :].astype(o_ref.dtype)         # (A8, TB)


def qnetwork_forward(state, params, action_size, *, block_b=BATCH_TILE):
    """state: (B, H, W) (anything flattening to state_size). Returns (B, action_size) f32."""
    w1, b1, w2, b2, w3, b3 = params
    B = state.shape[0]
    S = w1.shape[0]                      # state_size (contraction dim, no padding)
    F1p, F2p, Ap = w1.shape[1], w2.shape[1], w3.shape[1]
    A8 = _round_up(action_size, SUBLANE)  # output rows actually written (4 -> 8)

    # Flatten outside the kernel (metadata-only reshape, no extra HBM traffic).
    x = state.reshape(B, S).astype(jnp.float32)

    TB = block_b
    grid = (pl.cdiv(B, TB),)  # ragged last block handled by Pallas masking

    flops = 2 * B * (S * F1p + F1p * F2p + F2p * Ap)
    bytes_accessed = (4 * B * S + 4 * A8 * B                       # x in, q out
                      + 2 * (S * F1p + F1p * F2p + F2p * Ap)       # bf16 weights
                      + 4 * (F1p + F2p + Ap))                      # f32 biases

    # Weights/biases: full-array blocks, same block index every grid step
    # -> fetched once, VMEM-resident across the whole batch sweep.
    resident = lambda a: pl.BlockSpec(a.shape, lambda i: (0,) * a.ndim)

    out = pl.pallas_call(
        qnetwork_kernel,
        out_shape=jax.ShapeDtypeStruct((A8, B), jnp.float32),
        grid=grid,
        in_specs=[
            pl.BlockSpec((TB, S), lambda i: (i, 0)),   # x: tiled over batch
            resident(w1), resident(b1),
            resident(w2), resident(b2),
            resident(w3), resident(b3),
        ],
        out_specs=pl.BlockSpec((A8, TB), lambda i: (0, i)),  # batch on the lane dim
        compiler_params=pltpu.CompilerParams(
            dimension_semantics=("parallel",),               # megacore shard on v7x
        ),
        cost_estimate=pl.CostEstimate(
            flops=flops, transcendentals=0, bytes_accessed=bytes_accessed),
    )(x, w1, b1, w2, b2, w3, b3)

    # Tiny (action_size, B) -> (B, action_size) fixup outside the kernel.
    return out[:action_size, :].T


def init_params(key, state_size, action_size, fc1_units=80, fc2_units=80):
    """PyTorch nn.Linear default init (U[-1/sqrt(fan_in), +1/sqrt(fan_in)]).
    Weights stored transposed as (in_features, out_features), zero-padded to
    128-lane output widths, and cast to bf16 (MXU-native, half the DMA).
    Biases stay f32 (elementwise math stays f32 in the kernel)."""
    f1p = _round_up(fc1_units, LANE)
    f2p = _round_up(fc2_units, LANE)
    ap = _round_up(action_size, LANE)

    def linear(key, fan_in, fan_out, in_pad, out_pad):
        kw, kb = jax.random.split(key)
        bound = 1.0 / jnp.sqrt(jnp.float32(fan_in))
        w = jax.random.uniform(kw, (fan_in, fan_out), jnp.float32, -bound, bound)
        b = jax.random.uniform(kb, (1, fan_out), jnp.float32, -bound, bound)
        w = jnp.pad(w, ((0, in_pad - fan_in), (0, out_pad - fan_out)))
        b = jnp.pad(b, ((0, 0), (0, out_pad - fan_out)))
        return w.astype(jnp.bfloat16), b

    k1, k2, k3 = jax.random.split(key, 3)
    w1, b1 = linear(k1, state_size, fc1_units, state_size, f1p)
    w2, b2 = linear(k2, fc1_units, fc2_units, f1p, f2p)
    w3, b3 = linear(k3, fc2_units, action_size, f2p, ap)
    return (w1, b1, w2, b2, w3, b3)


def _reference(state, params, action_size):
    # Mirrors the kernel math (bf16 matmul operands, f32 accumulation/elementwise).
    w1, b1, w2, b2, w3, b3 = params
    x = state.reshape(state.shape[0], w1.shape[0])
    h = jnp.maximum(
        jnp.dot(x.astype(jnp.bfloat16), w1, preferred_element_type=jnp.float32) + b1, 0.0)
    h = jnp.maximum(
        jnp.dot(h.astype(jnp.bfloat16), w2, preferred_element_type=jnp.float32) + b2, 0.0)
    q = jnp.dot(h.astype(jnp.bfloat16), w3, preferred_element_type=jnp.float32) + b3
    return q[:, :action_size]


if __name__ == "__main__":
    # Gridworld: grid_size=4 -> state_size = 16; 4 actions.
    grid_size = 4
    state_size = grid_size * grid_size
    action_size = 4

    key = jax.random.PRNGKey(0)
    k_small, k_params, k_big = jax.random.split(key, 3)
    params = init_params(k_params, state_size, action_size)

    # Case 1: acting-sized batch. Single (fully ragged) grid step, no host padding.
    batch = 8
    state = jax.random.normal(k_small, (batch, grid_size, grid_size), jnp.float32)
    q = jax.block_until_ready(qnetwork_forward(state, params, action_size))
    ref = _reference(state, params, action_size)
    assert q.shape == (batch, action_size)
    assert jnp.allclose(q, ref, atol=1e-3, rtol=1e-3), float(jnp.max(jnp.abs(q - ref)))

    # Case 2: replay-sized ragged batch: grid = cdiv(300, 128) = 3 parallel steps,
    # last block partially out-of-bounds (masked store), weights VMEM-resident.
    batch2 = 300
    state2 = jax.random.normal(k_big, (batch2, grid_size, grid_size), jnp.float32)
    q2 = jax.block_until_ready(qnetwork_forward(state2, params, action_size))
    ref2 = _reference(state2, params, action_size)
    assert q2.shape == (batch2, action_size)
    assert jnp.allclose(q2, ref2, atol=1e-3, rtol=1e-3), float(jnp.max(jnp.abs(q2 - ref2)))

    print("KERNEL_OK")
</pallas_src>

<mosaic_0001>
module attributes {stable_mosaic.version = 11 : i64} {
  func.func @qnetwork_kernel(%arg0: i32, %arg1: memref<128x16xf32, #tpu.memory_space<vmem>>, %arg2: memref<16x128xbf16, #tpu.memory_space<vmem>>, %arg3: memref<1x128xf32, #tpu.memory_space<vmem>>, %arg4: memref<128x128xbf16, #tpu.memory_space<vmem>>, %arg5: memref<1x128xf32, #tpu.memory_space<vmem>>, %arg6: memref<128x128xbf16, #tpu.memory_space<vmem>>, %arg7: memref<1x128xf32, #tpu.memory_space<vmem>>, %arg8: memref<8x128xf32, #tpu.memory_space<vmem>>) attributes {dimension_semantics = [#tpu.dimension_semantics<parallel>], iteration_bounds = array<i64: 1>, scalar_prefetch = 0 : i64, scratch_operands = 0 : i64, tpu.core_type = #tpu.core_type<tc>, window_params = [{transform_indices = @transform_0, window_bounds = array<i64: 128, 16>}, {pipeline_mode = #tpu.pipeline_mode<synchronous>, transform_indices = @transform_1, window_bounds = array<i64: 16, 128>}, {pipeline_mode = #tpu.pipeline_mode<synchronous>, transform_indices = @transform_2, window_bounds = array<i64: 1, 128>}, {pipeline_mode = #tpu.pipeline_mode<synchronous>, transform_indices = @transform_3, window_bounds = array<i64: 128, 128>}, {pipeline_mode = #tpu.pipeline_mode<synchronous>, transform_indices = @transform_4, window_bounds = array<i64: 1, 128>}, {pipeline_mode = #tpu.pipeline_mode<synchronous>, transform_indices = @transform_5, window_bounds = array<i64: 128, 128>}, {pipeline_mode = #tpu.pipeline_mode<synchronous>, transform_indices = @transform_6, window_bounds = array<i64: 1, 128>}, {transform_indices = @transform_7, window_bounds = array<i64: 8, 128>}]} {
    %c0 = arith.constant 0 : index
    %c0_0 = arith.constant 0 : index
    %0 = vector.load %arg1[%c0, %c0_0] : memref<128x16xf32, #tpu.memory_space<vmem>>, vector<128x16xf32>
    %1 = arith.truncf %0 : vector<128x16xf32> to vector<128x16xbf16>
    %c0_1 = arith.constant 0 : index
    %c0_2 = arith.constant 0 : index
    %2 = vector.load %arg2[%c0_1, %c0_2] : memref<16x128xbf16, #tpu.memory_space<vmem>>, vector<16x128xbf16>
    %cst = arith.constant dense<0.000000e+00> : vector<128x128xf32>
    %3 = tpu.matmul %1, %2, %cst {dimension_numbers = #tpu.dot_dimension_numbers<[1], [0], [0], [1], [0, 0, 1, 1], [], []>} : vector<128x16xbf16>, vector<16x128xbf16>, vector<128x128xf32> -> vector<128x128xf32>
    %c0_3 = arith.constant 0 : index
    %c0_4 = arith.constant 0 : index
    %4 = vector.load %arg3[%c0_3, %c0_4] : memref<1x128xf32, #tpu.memory_space<vmem>>, vector<1x128xf32>
    %5 = vector.broadcast %4 : vector<1x128xf32> to vector<128x128xf32>
    %6 = arith.addf %3, %5 : vector<128x128xf32>
    %cst_5 = arith.constant 0.000000e+00 : f32
    %7 = vector.broadcast %cst_5 : f32 to vector<128x128xf32>
    %8 = arith.maximumf %6, %7 : vector<128x128xf32>
    %9 = arith.truncf %8 : vector<128x128xf32> to vector<128x128xbf16>
    %c0_6 = arith.constant 0 : index
    %c0_7 = arith.constant 0 : index
    %10 = vector.load %arg4[%c0_6, %c0_7] : memref<128x128xbf16, #tpu.memory_space<vmem>>, vector<128x128xbf16>
    %cst_8 = arith.constant dense<0.000000e+00> : vector<128x128xf32>
    %11 = tpu.matmul %9, %10, %cst_8 {dimension_numbers = #tpu.dot_dimension_numbers<[1], [0], [0], [1], [0, 0, 1, 1], [], []>} : vector<128x128xbf16>, vector<128x128xbf16>, vector<128x128xf32> -> vector<128x128xf32>
    %c0_9 = arith.constant 0 : index
    %c0_10 = arith.constant 0 : index
    %12 = vector.load %arg5[%c0_9, %c0_10] : memref<1x128xf32, #tpu.memory_space<vmem>>, vector<1x128xf32>
    %13 = vector.broadcast %12 : vector<1x128xf32> to vector<128x128xf32>
    %14 = arith.addf %11, %13 : vector<128x128xf32>
    %cst_11 = arith.constant 0.000000e+00 : f32
    %15 = vector.broadcast %cst_11 : f32 to vector<128x128xf32>
    %16 = arith.maximumf %14, %15 : vector<128x128xf32>
    %17 = arith.truncf %16 : vector<128x128xf32> to vector<128x128xbf16>
    %c0_12 = arith.constant 0 : index
    %c0_13 = arith.constant 0 : index
    %18 = vector.load %arg6[%c0_12, %c0_13] : memref<128x128xbf16, #tpu.memory_space<vmem>>, vector<128x128xbf16>
    %cst_14 = arith.constant dense<0.000000e+00> : vector<128x128xf32>
    %19 = tpu.matmul %17, %18, %cst_14 {dimension_numbers = #tpu.dot_dimension_numbers<[1], [0], [0], [1], [0, 0, 1, 1], [], []>} : vector<128x128xbf16>, vector<128x128xbf16>, vector<128x128xf32> -> vector<128x128xf32>
    %c0_15 = arith.constant 0 : index
    %c0_16 = arith.constant 0 : index
    %20 = vector.load %arg7[%c0_15, %c0_16] : memref<1x128xf32, #tpu.memory_space<vmem>>, vector<1x128xf32>
    %21 = vector.broadcast %20 : vector<1x128xf32> to vector<128x128xf32>
    %22 = arith.addf %19, %21 : vector<128x128xf32>
    %23 = tpu.transpose %22, [1, 0] : vector<128x128xf32> -> vector<128x128xf32>
    %24 = vector.extract_strided_slice %23 {offsets = [0, 0], sizes = [8, 128], strides = [1, 1]} : vector<128x128xf32> to vector<8x128xf32>
    %c0_17 = arith.constant 0 : index
    %c0_18 = arith.constant 0 : index
    %25 = vector.load %arg8[%c0_17, %c0_18] : memref<8x128xf32, #tpu.memory_space<vmem>>, vector<8x128xf32>
    tpu.vector_store %arg8[%c0_17, %c0_18], %24 {strides = array<i32>} : memref<8x128xf32, #tpu.memory_space<vmem>>, vector<8x128xf32>,
    return
  }
  func.func @transform_0(%arg0: i32) -> (i32, i32) {
    %c0_i32 = arith.constant 0 : i32
    %c0_i32_0 = arith.constant 0 : i32
    return %arg0, %c0_i32 : i32, i32
  }
  func.func @transform_1(%arg0: i32) -> (i32, i32) {
    %c0_i32 = arith.constant 0 : i32
    %c0_i32_0 = arith.constant 0 : i32
    %c0_i32_1 = arith.constant 0 : i32
    return %c0_i32, %c0_i32_0 : i32, i32
  }
  func.func @transform_2(%arg0: i32) -> (i32, i32) {
    %c0_i32 = arith.constant 0 : i32
    %c0_i32_0 = arith.constant 0 : i32
    %c0_i32_1 = arith.constant 0 : i32
    return %c0_i32, %c0_i32_0 : i32, i32
  }
  func.func @transform_3(%arg0: i32) -> (i32, i32) {
    %c0_i32 = arith.constant 0 : i32
    %c0_i32_0 = arith.constant 0 : i32
    %c0_i32_1 = arith.constant 0 : i32
    return %c0_i32, %c0_i32_0 : i32, i32
  }
  func.func @transform_4(%arg0: i32) -> (i32, i32) {
    %c0_i32 = arith.constant 0 : i32
    %c0_i32_0 = arith.constant 0 : i32
    %c0_i32_1 = arith.constant 0 : i32
    return %c0_i32, %c0_i32_0 : i32, i32
  }
  func.func @transform_5(%arg0: i32) -> (i32, i32) {
    %c0_i32 = arith.constant 0 : i32
    %c0_i32_0 = arith.constant 0 : i32
    %c0_i32_1 = arith.constant 0 : i32
    return %c0_i32, %c0_i32_0 : i32, i32
  }
  func.func @transform_6(%arg0: i32) -> (i32, i32) {
    %c0_i32 = arith.constant 0 : i32
    %c0_i32_0 = arith.constant 0 : i32
    %c0_i32_1 = arith.constant 0 : i32
    return %c0_i32, %c0_i32_0 : i32, i32
  }
  func.func @transform_7(%arg0: i32) -> (i32, i32) {
    %c0_i32 = arith.constant 0 : i32
    %c0_i32_0 = arith.constant 0 : i32
    return %c0_i32, %arg0 : i32, i32
  }
}

</mosaic_0001>

<bundles_post_ra>
// kernel: tpu_custom_call.1
= control target key start
LH: loop header
LB: loop body
LE: loop exit
PB: predicated region body
PF: predicated region fallthrough
CT: control target
= control target key end

     0   :  { %12 = vsyncpa [#allocation3], 0  ;;  %s883_s0 = inlined_call_operand.hbm [shape: f32[8,16], index: 0, kind: input, shape index: {}]   ;;  %s884_s1 = inlined_call_operand.hbm [shape: bf16[16,128], index: 1, kind: input, shape index: {}]   ;;  %s885_s2 = inlined_call_operand.vmem [shape: f32[1,128], index: 2, kind: input, shape index: {}]   ;;  %s886_s3 = inlined_call_operand.hbm [shape: bf16[128,128], index: 3, kind: input, shape index: {}]   ;;  %s887_s4 = inlined_call_operand.vmem [shape: f32[1,128], index: 4, kind: input, shape index: {}]   ;;  %s888_s5 = inlined_call_operand.hbm [shape: bf16[128,128], index: 5, kind: input, shape index: {}]   ;;  %s889_s6 = inlined_call_operand.vmem [shape: f32[1,128], index: 6, kind: input, shape index: {}]   ;;  %s890_s7 = inlined_call_operand.hbm [shape: f32[8,8], index: 7, kind: output, shape index: {}]  }
   0x1   :  { %13 = vsyncpa [#allocation6], 0 }
   0x2   :  { %14 = vsyncpa [#allocation9], 0 }
   0x3   :  { %15 = vsyncpa [#allocation4], 0  ;;  %s33_s26 = sshll.u32 %s884_s1, 4  ;;  %s34_s26 = int_to_ptr.hbm [resolvable:$true] %s33_s26 }
   0x4   :  { %19 = vsyncadd [#allocation3], 1920  ;;  %s784_s27 = smov [#allocation5]   ;;  %s20_s8 = sshll.u32 %s883_s0, 4  ;;  %s21_s8 = int_to_ptr.hbm [resolvable:$true] %s20_s8 }
   0x5   :  { %s35_s28 = sshll.u32 %s784_s27, 4  ;;  %s785_s9 = smov 64   ;;  %s36_s28 = int_to_ptr.vmem [resolvable:$true] %s35_s28 }
   0x6   :  { %s786_s10 = smov 4   ;;  %s787_s11 = smov [#allocation2]  }
   0x7   :  { %41 = dma.hbm_to_vmem [thread:$0]  %s34_s26, 128, %s36_s28, [#allocation6], %s785_s9, %s785_s9, %s786_s10  }
   0x8   :  { %s22_s12 = sshll.u32 %s787_s11, 4  ;;  %s788_s13 = smov 128   ;;  %s23_s12 = int_to_ptr.vmem [resolvable:$true] %s22_s12 }
   0x9   :  { %s789_s14 = smov 8   ;;  %s48_s16 = sshll.u32 %s886_s3, 4  ;;  %s49_s16 = int_to_ptr.hbm [resolvable:$true] %s48_s16 }
   0xa   :  { %28 = dma.hbm_to_vmem [thread:$0]  %s21_s8, 128, %s23_s12, [#allocation3], %s788_s13, %s788_s13, %s789_s14  }
   0xb   :  { %s790_s17 = smov [#allocation7]   ;;  %s63_s20 = sshll.u32 %s888_s5, 4  ;;  %s64_s20 = int_to_ptr.hbm [resolvable:$true] %s63_s20 }
   0xc   :  { %s50_s18 = sshll.u32 %s790_s17, 4  ;;  %s791_s21 = smov [#allocation8]   ;;  %s51_s18 = int_to_ptr.vmem [resolvable:$true] %s50_s18 }
   0xd   :  { %56 = dma.hbm_to_vmem [thread:$0]  %s49_s16, 1024, %s51_s18, [#allocation6], %s785_s9, %s785_s9, %s786_s10  }
   0xe   :  { %s65_s22 = sshll.u32 %s791_s21, 4  ;;  %s66_s22 = int_to_ptr.vmem [resolvable:$true] %s65_s22 }
   0xf   :  { %71 = dma.hbm_to_vmem [thread:$0]  %s64_s20, 1024, %s66_s22, [#allocation9], %s785_s9, %s785_s9, %s786_s10  }
  0x10   :  { %776 = dma.done.wait [#allocation3], 2048  }
  0x11   :  { %777 = vsyncadd [#allocation3], 4294965248 }
  0x12   :  { %778 = dma.done.wait [#allocation6], 1152  }
  0x13   :  { %779 = vsyncadd [#allocation6], 4294966144 }
  0x14   :  { %780 = dma.done.wait [#allocation9], 1024  }
  0x15   :  { %781 = vsyncadd [#allocation9], 4294966272  ;;  %v611_v0 = vld [vmem:[#allocation5] sm:$0xff]  ;;  %v92_v2 = vld [vmem:[#allocation2 + $0x8] sm:$0xff]  ;;  %vm127_vm0 = vcmask 130048   ;;  %s523_s28 = sshll.u32 %s890_s7, 4  ;;  %s524_s28 = int_to_ptr.hbm [resolvable:$true] %s523_s28 }
  0x16   :  { %v91_v1 = vld [vmem:[#allocation2] sm:$0xff]  ;;  %159 = vmatpush.bf16.msra.mxu0 %v611_v0  ;;  %v93_v4 = vld [vmem:[#allocation2 + $0x10] sm:$0xff]  ;;  %v94_v5 = vld [vmem:[#allocation2 + $0x18] sm:$0xff] }
  0x17   :  { %v107_v3 = vpack.c.bf16 %v92_v2, %v91_v1  ;;  %v108_v6 = vpack.c.bf16 %v94_v5, %v93_v4  ;;  %v95_v7 = vld [vmem:[#allocation2 + $0x20] sm:$0xff]  ;;  %v96_v8 = vld [vmem:[#allocation2 + $0x28] sm:$0xff]  ;;  %v97_v10 = vld [vmem:[#allocation2 + $0x30] sm:$0xff] }
  0x18   :  { %v109_v9 = vpack.c.bf16 %v96_v8, %v95_v7  ;;  %v98_v11 = vld [vmem:[#allocation2 + $0x38] sm:$0xff]  ;;  %v99_v13 = vld [vmem:[#allocation2 + $0x40] sm:$0xff]  ;;  %v100_v14 = vld [vmem:[#allocation2 + $0x48] sm:$0xff] }
  0x19   :  { %539 = vmatmul.msk.bf16.vlgmr.msra.gmra.mxu0 %vm127_vm0, %v107_v3  ;;  %v110_v12 = vpack.c.bf16 %v98_v11, %v97_v10  ;;  %v111_v15 = vpack.c.bf16 %v100_v14, %v99_v13  ;;  %v619_v16 = vld [vmem:[#allocation7 + $0x38] sm:$0xff]  ;;  %v101_v17 = vld [vmem:[#allocation2 + $0x50] sm:$0xff]  ;;  %v102_v18 = vld [vmem:[#allocation2 + $0x58] sm:$0xff] }
  0x1a   :  { %293 = vmatpush.bf16.msra.mxu1 %v619_v16  ;;  %628 = vmatpush.bf16.msra.mxu3 %v619_v16  ;;  %v112_v19 = vpack.c.bf16 %v102_v18, %v101_v17  ;;  %v618_v20 = vld [vmem:[#allocation7 + $0x30] sm:$0xff]  ;;  %v617_v21 = vld [vmem:[#allocation7 + $0x28] sm:$0xff]  ;;  %v616_v22 = vld [vmem:[#allocation7 + $0x20] sm:$0xff] }
  0x1b   :  { %v103_v23 = vld [vmem:[#allocation2 + $0x60] sm:$0xff]  ;;  %v104_v24 = vld [vmem:[#allocation2 + $0x68] sm:$0xff]  ;;  %v614_v27 = vld [vmem:[#allocation7 + $0x10] sm:$0xff] }
  0x1c   :  { %v615_v25 = vld [vmem:[#allocation7 + $0x18] sm:$0xff]  ;;  %v113_v26 = vpack.c.bf16 %v104_v24, %v103_v23  ;;  %v613_v28 = vld [vmem:[#allocation7 + $0x8] sm:$0xff]  ;;  %v612_v29 = vld [vmem:[#allocation7] sm:$0xff] }
  0x1d   :  { %v105_v30 = vld [vmem:[#allocation2 + $0x70] sm:$0xff]  ;;  %v106_v31 = vld [vmem:[#allocation2 + $0x78] sm:$0xff]  ;;  %v856_v34 = vld [vmem:[%s885_s2] ss:$0 sm:$0xff] }
  0x1e   :  { %294 = vmatpush.bf16.msra.mxu1 %v618_v20  ;;  %629 = vmatpush.bf16.msra.mxu3 %v618_v20  ;;  %v114_v32 = vpack.c.bf16 %v106_v31, %v105_v30  ;;  %v626_v13 = vld [vmem:[#allocation8 + $0x30] sm:$0xff]  ;;  %v624_v16 = vld [vmem:[#allocation8 + $0x20] sm:$0xff]  ;;  %v623_v20 = vld [vmem:[#allocation8 + $0x18] sm:$0xff] }
  0x1f   :  { %v622_v24 = vld [vmem:[#allocation8 + $0x10] sm:$0xff] }
  0x22   :  { %295 = vmatpush.bf16.msra.mxu1 %v617_v21  ;;  %630 = vmatpush.bf16.msra.mxu3 %v617_v21 }
  0x26   :  { %296 = vmatpush.bf16.msra.mxu1 %v616_v22  ;;  %631 = vmatpush.bf16.msra.mxu3 %v616_v22 }
  0x29   :  { %540 = vmatmul.msk.bf16.gmra.mxu0 %vm127_vm0, %v108_v6 }
  0x2a   :  { %297 = vmatpush.bf16.msra.mxu1 %v615_v25  ;;  %632 = vmatpush.bf16.msra.mxu3 %v615_v25 }
  0x2e   :  { %298 = vmatpush.bf16.msra.mxu1 %v614_v27  ;;  %633 = vmatpush.bf16.msra.mxu3 %v614_v27  ;;  %v620_v27 = vld [vmem:[#allocation8] sm:$0xff] }
  0x32   :  { %299 = vmatpush.bf16.msra.mxu1 %v613_v28  ;;  %634 = vmatpush.bf16.msra.mxu3 %v613_v28 }
  0x36   :  { %300 = vmatpush.bf16.msra.mxu1 %v612_v29  ;;  %635 = vmatpush.bf16.msra.mxu3 %v612_v29 }
  0x39   :  { %541 = vmatmul.msk.bf16.gmra.mxu0 %vm127_vm0, %v109_v9  ;;  %v627_v9 = vld [vmem:[#allocation8 + $0x38] sm:$0xff] }
  0x3a   :  { %434 = vmatpush.bf16.msra.mxu2 %v627_v9  ;;  %636 = vmatpush.bf16.msrb.mxu3 %v627_v9 }
  0x3e   :  { %435 = vmatpush.bf16.msra.mxu2 %v626_v13  ;;  %637 = vmatpush.bf16.msrb.mxu3 %v626_v13 }
  0x49   :  { %542 = vmatmul.msk.bf16.gmra.mxu0 %vm127_vm0, %v110_v12 }
  0x59   :  { %543 = vmatmul.msk.bf16.gmra.mxu0 %vm127_vm0, %v111_v15  ;;  %v625_v15 = vld [vmem:[#allocation8 + $0x28] sm:$0xff] }
  0x5a   :  { %436 = vmatpush.bf16.msra.mxu2 %v625_v15  ;;  %638 = vmatpush.bf16.msrb.mxu3 %v625_v15 }
  0x5e   :  { %437 = vmatpush.bf16.msra.mxu2 %v624_v16  ;;  %639 = vmatpush.bf16.msrb.mxu3 %v624_v16 }
  0x62   :  { %438 = vmatpush.bf16.msra.mxu2 %v623_v20  ;;  %640 = vmatpush.bf16.msrb.mxu3 %v623_v20 }
  0x66   :  { %439 = vmatpush.bf16.msra.mxu2 %v622_v24  ;;  %641 = vmatpush.bf16.msrb.mxu3 %v622_v24 }
  0x69   :  { %544 = vmatmul.msk.bf16.gmra.mxu0 %vm127_vm0, %v112_v19 }
  0x79   :  { %545 = vmatmul.msk.bf16.gmra.mxu0 %vm127_vm0, %v113_v26  ;;  %v621_v26 = vld [vmem:[#allocation8 + $0x8] sm:$0xff] }
  0x7a   :  { %440 = vmatpush.bf16.msra.mxu2 %v621_v26  ;;  %642 = vmatpush.bf16.msrb.mxu3 %v621_v26 }
  0x7e   :  { %441 = vmatpush.bf16.msra.mxu2 %v620_v27  ;;  %643 = vmatpush.bf16.msrb.mxu3 %v620_v27  ;;  %v655_v27 = vld [vmem:[%s889_s6] ss:$0 sm:$0xff]  ;;  %s792_s6 = smov [#allocation10]  }
  0x7f   :  { %s521_s25 = sshll.u32 %s792_s6, 4  ;;  %s522_s25 = int_to_ptr.vmem [resolvable:$true] %s521_s25 }
  0x89   :  { %546 = vmatmul.msk.bf16.gmra.mxu0 %vm127_vm0, %v114_v32 }
  0x96   :  { %v161_v33 = vpop.f32.mrf.mxu0 }
  0x97   :  { %v162_v35 = vadd.f32 %v856_v34, %v161_v33 }
  0x99   :  { %v201_v38 = vmax.f32 %v162_v35, 0.0 }
  0x9e   :  { %v163_v36 = vpop.f32.mrf.mxu0 }
  0x9f   :  { %v164_v37 = vadd.f32 %v856_v34, %v163_v36  ;;  %v654_v36 = vld [vmem:[%s887_s4] ss:$0 sm:$0xff] }
  0xa1   :  { %v202_v39 = vmax.f32 %v164_v37, 0.0 }
  0xa3   :  { %v217_v40 = vpack.c.bf16 %v202_v39, %v201_v38 }
  0xa5   :  { %301 = vmatmul.bf16.vlgmr.msra.gmra.mxu1 %v217_v40 }
  0xa6   :  { %v166_v41 = vpop.f32.mrf.mxu0 }
  0xa7   :  { %v167_v42 = vadd.f32 %v856_v34, %v166_v41 }
  0xa9   :  { %v203_v45 = vmax.f32 %v167_v42, 0.0 }
  0xae   :  { %v168_v43 = vpop.f32.mrf.mxu0 }
  0xaf   :  { %v169_v44 = vadd.f32 %v856_v34, %v168_v43 }
  0xb1   :  { %v204_v46 = vmax.f32 %v169_v44, 0.0 }
  0xb3   :  { %v218_v47 = vpack.c.bf16 %v204_v46, %v203_v45 }
  0xb5   :  { %306 = vmatmul.bf16.gmra.mxu1 %v218_v47 }
  0xb6   :  { %v171_v48 = vpop.f32.mrf.mxu0 }
  0xb7   :  { %v172_v49 = vadd.f32 %v856_v34, %v171_v48 }
  0xb9   :  { %v205_v52 = vmax.f32 %v172_v49, 0.0 }
  0xbe   :  { %v173_v50 = vpop.f32.mrf.mxu0 }
  0xbf   :  { %v174_v51 = vadd.f32 %v856_v34, %v173_v50 }
  0xc1   :  { %v206_v53 = vmax.f32 %v174_v51, 0.0 }
  0xc3   :  { %v219_v54 = vpack.c.bf16 %v206_v53, %v205_v52 }
  0xc5   :  { %311 = vmatmul.bf16.gmra.mxu1 %v219_v54 }
  0xc6   :  { %v176_v55 = vpop.f32.mrf.mxu0 }
  0xc7   :  { %v177_v56 = vadd.f32 %v856_v34, %v176_v55 }
  0xc9   :  { %v207_v59 = vmax.f32 %v177_v56, 0.0 }
  0xce   :  { %v178_v57 = vpop.f32.mrf.mxu0 }
  0xcf   :  { %v179_v58 = vadd.f32 %v856_v34, %v178_v57 }
  0xd1   :  { %v208_v60 = vmax.f32 %v179_v58, 0.0 }
  0xd3   :  { %v220_v61 = vpack.c.bf16 %v208_v60, %v207_v59 }
  0xd5   :  { %316 = vmatmul.bf16.gmra.mxu1 %v220_v61 }
  0xd6   :  { %v181_v62 = vpop.f32.mrf.mxu0 }
  0xd7   :  { %v182_v63 = vadd.f32 %v856_v34, %v181_v62 }
  0xd9   :  { %v209_v2 = vmax.f32 %v182_v63, 0.0 }
  0xde   :  { %v183_v0 = vpop.f32.mrf.mxu0 }
  0xdf   :  { %v184_v1 = vadd.f32 %v856_v34, %v183_v0 }
  0xe1   :  { %v210_v3 = vmax.f32 %v184_v1, 0.0 }
  0xe3   :  { %v221_v4 = vpack.c.bf16 %v210_v3, %v209_v2 }
  0xe5   :  { %321 = vmatmul.bf16.gmra.mxu1 %v221_v4 }
  0xe6   :  { %v186_v5 = vpop.f32.mrf.mxu0 }
  0xe7   :  { %v187_v6 = vadd.f32 %v856_v34, %v186_v5 }
  0xe9   :  { %v211_v10 = vmax.f32 %v187_v6, 0.0 }
  0xee   :  { %v188_v7 = vpop.f32.mrf.mxu0 }
  0xef   :  { %v189_v8 = vadd.f32 %v856_v34, %v188_v7 }
  0xf1   :  { %v212_v11 = vmax.f32 %v189_v8, 0.0 }
  0xf3   :  { %v222_v12 = vpack.c.bf16 %v212_v11, %v211_v10 }
  0xf5   :  { %326 = vmatmul.bf16.gmra.mxu1 %v222_v12 }
  0xf6   :  { %v191_v14 = vpop.f32.mrf.mxu0 }
  0xf7   :  { %v192_v17 = vadd.f32 %v856_v34, %v191_v14 }
  0xf9   :  { %v213_v21 = vmax.f32 %v192_v17, 0.0 }
  0xfe   :  { %v193_v18 = vpop.f32.mrf.mxu0 }
  0xff   :  { %v194_v19 = vadd.f32 %v856_v34, %v193_v18 }
 0x101   :  { %v214_v22 = vmax.f32 %v194_v19, 0.0 }
 0x103   :  { %v223_v23 = vpack.c.bf16 %v214_v22, %v213_v21 }
 0x105   :  { %331 = vmatmul.bf16.vlgmr.msra.gmra.mxu3 %v223_v23 }
 0x106   :  { %v196_v25 = vpop.f32.mrf.mxu0 }
 0x107   :  { %v197_v28 = vadd.f32 %v856_v34, %v196_v25 }
 0x109   :  { %v215_v31 = vmax.f32 %v197_v28, 0.0 }
 0x10e   :  { %v198_v29 = vpop.f32.mrf.mxu0 }
 0x10f   :  { %v199_v30 = vadd.f32 %v856_v34, %v198_v29 }
 0x111   :  { %v216_v32 = vmax.f32 %v199_v30, 0.0 }
 0x113   :  { %v224_v33 = vpack.c.bf16 %v216_v32, %v215_v31 }
 0x115   :  { %336 = vmatmul.bf16.gmra.mxu3 %v224_v33 }
 0x122   :  { %v302_v35 = vpop.f32.mrf.mxu1 }
 0x123   :  { %v303_v37 = vadd.f32 %v654_v36, %v302_v35 }
 0x125   :  { %v342_v40 = vmax.f32 %v303_v37, 0.0 }
 0x12a   :  { %v304_v38 = vpop.f32.mrf.mxu1 }
 0x12b   :  { %v305_v39 = vadd.f32 %v654_v36, %v304_v38 }
 0x12d   :  { %v343_v41 = vmax.f32 %v305_v39, 0.0 }
 0x12f   :  { %v358_v42 = vpack.c.bf16 %v343_v41, %v342_v40 }
 0x131   :  { %442 = vmatmul.bf16.vlgmr.msra.gmra.mxu2 %v358_v42 }
 0x132   :  { %v307_v43 = vpop.f32.mrf.mxu1 }
 0x133   :  { %v308_v44 = vadd.f32 %v654_v36, %v307_v43 }
 0x135   :  { %v344_v46 = vmax.f32 %v308_v44, 0.0 }
 0x13a   :  { %v309_v45 = vpop.f32.mrf.mxu1 }
 0x13b   :  { %v310_v34 = vadd.f32 %v654_v36, %v309_v45 }
 0x13d   :  { %v345_v47 = vmax.f32 %v310_v34, 0.0 }
 0x13f   :  { %v359_v48 = vpack.c.bf16 %v345_v47, %v344_v46 }
 0x141   :  { %447 = vmatmul.bf16.gmra.mxu2 %v359_v48 }
 0x142   :  { %v312_v49 = vpop.f32.mrf.mxu1 }
 0x143   :  { %v313_v50 = vadd.f32 %v654_v36, %v312_v49 }
 0x145   :  { %v346_v53 = vmax.f32 %v313_v50, 0.0 }
 0x14a   :  { %v314_v51 = vpop.f32.mrf.mxu1 }
 0x14b   :  { %v315_v52 = vadd.f32 %v654_v36, %v314_v51 }
 0x14d   :  { %v347_v54 = vmax.f32 %v315_v52, 0.0 }
 0x14f   :  { %v360_v55 = vpack.c.bf16 %v347_v54, %v346_v53 }
 0x151   :  { %452 = vmatmul.bf16.gmra.mxu2 %v360_v55 }
 0x152   :  { %v317_v56 = vpop.f32.mrf.mxu1 }
 0x153   :  { %v318_v57 = vadd.f32 %v654_v36, %v317_v56 }
 0x155   :  { %v348_v60 = vmax.f32 %v318_v57, 0.0 }
 0x15a   :  { %v319_v58 = vpop.f32.mrf.mxu1 }
 0x15b   :  { %v320_v59 = vadd.f32 %v654_v36, %v319_v58 }
 0x15d   :  { %v349_v61 = vmax.f32 %v320_v59, 0.0 }
 0x15f   :  { %v361_v62 = vpack.c.bf16 %v349_v61, %v348_v60 }
 0x161   :  { %457 = vmatmul.bf16.gmra.mxu2 %v361_v62 }
 0x162   :  { %v322_v63 = vpop.f32.mrf.mxu1 }
 0x163   :  { %v323_v0 = vadd.f32 %v654_v36, %v322_v63 }
 0x165   :  { %v350_v3 = vmax.f32 %v323_v0, 0.0 }
 0x16a   :  { %v324_v1 = vpop.f32.mrf.mxu1 }
 0x16b   :  { %v325_v2 = vadd.f32 %v654_v36, %v324_v1 }
 0x16d   :  { %v351_v4 = vmax.f32 %v325_v2, 0.0 }
 0x16f   :  { %v362_v5 = vpack.c.bf16 %v351_v4, %v350_v3 }
 0x171   :  { %462 = vmatmul.bf16.gmra.mxu2 %v362_v5 }
 0x172   :  { %v327_v6 = vpop.f32.mrf.mxu1 }
 0x173   :  { %v328_v7 = vadd.f32 %v654_v36, %v327_v6 }
 0x175   :  { %v352_v10 = vmax.f32 %v328_v7, 0.0 }
 0x17a   :  { %v329_v8 = vpop.f32.mrf.mxu1 }
 0x17b   :  { %v330_v9 = vadd.f32 %v654_v36, %v329_v8 }
 0x17d   :  { %v353_v11 = vmax.f32 %v330_v9, 0.0 }
 0x17f   :  { %v363_v12 = vpack.c.bf16 %v353_v11, %v352_v10 }
 0x181   :  { %467 = vmatmul.bf16.gmra.mxu2 %v363_v12 }
 0x188   :  { %v332_v13 = vpop.f32.mrf.mxu3 }
 0x189   :  { %v333_v14 = vadd.f32 %v654_v36, %v332_v13 }
 0x18b   :  { %v354_v17 = vmax.f32 %v333_v14, 0.0 }
 0x190   :  { %v334_v15 = vpop.f32.mrf.mxu3 }
 0x191   :  { %v335_v16 = vadd.f32 %v654_v36, %v334_v15 }
 0x193   :  { %v355_v18 = vmax.f32 %v335_v16, 0.0 }
 0x195   :  { %v364_v19 = vpack.c.bf16 %v355_v18, %v354_v17 }
 0x197   :  { %472 = vmatmul.bf16.vlgmr.msrb.gmra.mxu3 %v364_v19 }
 0x198   :  { %v337_v20 = vpop.f32.mrf.mxu3 }
 0x199   :  { %v338_v21 = vadd.f32 %v654_v36, %v337_v20 }
 0x19b   :  { %v356_v24 = vmax.f32 %v338_v21, 0.0 }
 0x1a0   :  { %v339_v22 = vpop.f32.mrf.mxu3 }
 0x1a1   :  { %v340_v23 = vadd.f32 %v654_v36, %v339_v22 }
 0x1a3   :  { %v357_v25 = vmax.f32 %v340_v23, 0.0 }
 0x1a5   :  { %v365_v26 = vpack.c.bf16 %v357_v25, %v356_v24 }
 0x1a7   :  { %477 = vmatmul.bf16.gmra.mxu3 %v365_v26 }
 0x1b4   :  { %v443_v28 = vpop.f32.mrf.mxu2 }
 0x1b5   :  { %v444_v29 = vadd.f32 %v655_v27, %v443_v28 }
 0x1b7   :  { %483 = vxpose.xlu0.b32.start [1/16] (narrow) %v444_v29, 8 }
 0x1bc   :  { %v445_v30 = vpop.f32.mrf.mxu2 }
 0x1bd   :  { %v446_v31 = vadd.f32 %v655_v27, %v445_v30 }
 0x1bf   :  { %484 = vxpose.xlu0.b32.cont [2/16] (narrow) %v446_v31, 8 }
 0x1c4   :  { %v448_v32 = vpop.f32.mrf.mxu2 }
 0x1c5   :  { %v449_v33 = vadd.f32 %v655_v27, %v448_v32 }
 0x1c7   :  { %485 = vxpose.xlu0.b32.cont [3/16] (narrow) %v449_v33, 8 }
 0x1cc   :  { %v450_v35 = vpop.f32.mrf.mxu2 }
 0x1cd   :  { %v451_v37 = vadd.f32 %v655_v27, %v450_v35 }
 0x1cf   :  { %486 = vxpose.xlu0.b32.cont [4/16] (narrow) %v451_v37, 8 }
 0x1d4   :  { %v453_v36 = vpop.f32.mrf.mxu2 }
 0x1d5   :  { %v454_v38 = vadd.f32 %v655_v27, %v453_v36 }
 0x1d7   :  { %487 = vxpose.xlu0.b32.cont [5/16] (narrow) %v454_v38, 8 }
 0x1dc   :  { %v455_v39 = vpop.f32.mrf.mxu2 }
 0x1dd   :  { %v456_v40 = vadd.f32 %v655_v27, %v455_v39 }
 0x1df   :  { %488 = vxpose.xlu0.b32.cont [6/16] (narrow) %v456_v40, 8 }
 0x1e4   :  { %v458_v41 = vpop.f32.mrf.mxu2 }
 0x1e5   :  { %v459_v42 = vadd.f32 %v655_v27, %v458_v41 }
 0x1e7   :  { %489 = vxpose.xlu0.b32.cont [7/16] (narrow) %v459_v42, 8 }
 0x1ec   :  { %v460_v43 = vpop.f32.mrf.mxu2 }
 0x1ed   :  { %v461_v44 = vadd.f32 %v655_v27, %v460_v43 }
 0x1ef   :  { %490 = vxpose.xlu0.b32.cont [8/16] (narrow) %v461_v44, 8 }
 0x1f4   :  { %v463_v45 = vpop.f32.mrf.mxu2 }
 0x1f5   :  { %v464_v34 = vadd.f32 %v655_v27, %v463_v45 }
 0x1f7   :  { %491 = vxpose.xlu0.b32.cont [9/16] (narrow) %v464_v34, 8 }
 0x1fc   :  { %v465_v46 = vpop.f32.mrf.mxu2 }
 0x1fd   :  { %v466_v47 = vadd.f32 %v655_v27, %v465_v46 }
 0x1ff   :  { %492 = vxpose.xlu0.b32.cont [10/16] (narrow) %v466_v47, 8 }
 0x204   :  { %v468_v48 = vpop.f32.mrf.mxu2 }
 0x205   :  { %v469_v49 = vadd.f32 %v655_v27, %v468_v48 }
 0x207   :  { %493 = vxpose.xlu0.b32.cont [11/16] (narrow) %v469_v49, 8 }
 0x20c   :  { %v470_v50 = vpop.f32.mrf.mxu2 }
 0x20d   :  { %v471_v51 = vadd.f32 %v655_v27, %v470_v50 }
 0x20f   :  { %494 = vxpose.xlu0.b32.cont [12/16] (narrow) %v471_v51, 8 }
 0x21a   :  { %v473_v52 = vpop.f32.mrf.mxu3 }
 0x21b   :  { %v474_v53 = vadd.f32 %v655_v27, %v473_v52 }
 0x21d   :  { %495 = vxpose.xlu0.b32.cont [13/16] (narrow) %v474_v53, 8 }
 0x222   :  { %v475_v54 = vpop.f32.mrf.mxu3 }
 0x223   :  { %v476_v55 = vadd.f32 %v655_v27, %v475_v54 }
 0x225   :  { %496 = vxpose.xlu0.b32.cont [14/16] (narrow) %v476_v55, 8 }
 0x22a   :  { %v478_v56 = vpop.f32.mrf.mxu3 }
 0x22b   :  { %v479_v57 = vadd.f32 %v655_v27, %v478_v56 }
 0x22d   :  { %497 = vxpose.xlu0.b32.cont [15/16] (narrow) %v479_v57, 8 }
 0x232   :  { %v480_v58 = vpop.f32.mrf.mxu3 }
 0x233   :  { %v481_v59 = vadd.f32 %v655_v27, %v480_v58 }
 0x235   :  { %498 = vxpose.xlu0.b32.end [16/16] (narrow) %v481_v59, 8 }
 0x261   :  { %v499_v60 = vpop.trf.xlu0 }
 0x262   :  { %515 = vst [vmem:[#allocation10] sm:$0xff] %v499_v60 }
 0x263   :  { %526 = dma.vmem_to_hbm [thread:$0]  %s522_s25, 128, %s524_s28, [#allocation4]  }
 0x264   :  { %782 = dma.done.wait [#allocation4], 128  }
 0x265   :  { %783 = vsyncadd [#allocation4], 4294967168 }
 0x266   :  { %531 = vsyncpa [#allocation3], 1 }
 0x267   :  { %532 = vsyncpa [#allocation6], 1 }
 0x268   :  { %533 = vsyncpa [#allocation9], 1 }
 0x269   :  { %534 = vsyncpa [#allocation4], 1 }

</bundles_post_ra>
